<compile_context>
chip_gen: v6e
topology: v6e:2x2x1
jax: 0.10.0
libtpu: 0.0.40
codegen_flags: <defaults>
</compile_context>

<pallas_src>
import jax
import jax.numpy as jnp
from jax import lax
from jax.experimental import pallas as pl
from jax.experimental.pallas import tpu as pltpu

N_IN = 4
N_IN_PAD = 8                    # x / W1 padded so fc1 can use the MXU
N_HIDDEN = 128
N_OUT = 2
TB_MAX = 1024                   # target batch rows per grid step (sweepable)
DROP_P = 0.3
KEEP_THRESH16 = int(DROP_P * 65536)     # keep iff 16-bit hash half >= this
_SEED_MIX = 0x61C88647                  # golden-ratio odd constant (fits int32)


def _srl(x, n):
    return lax.shift_right_logical(x, jnp.int32(n))


def _wang_hash(x):
    """Wang integer hash (int32, wrapping arithmetic)."""
    x = (x ^ jnp.int32(61)) ^ _srl(x, 16)
    x = x * jnp.int32(9)
    x = x ^ _srl(x, 4)
    x = x * jnp.int32(0x27D4EB2D)
    x = x ^ _srl(x, 15)
    return x


def qnet_kernel(seed_ref,                                     # SMEM (scalar prefetch)
                x_ref, w1_ref, b1_ref, w2_ref, b2_ref, w3_ref, b3_ref,
                o_ref):
    tb = x_ref.shape[0]
    tile = pl.program_id(0)
    seed = seed_ref[0]

    # --- fc1 + relu (MXU: x padded to K=8, bf16 operands, f32 accumulate) ---
    h = jnp.dot(x_ref[...].astype(jnp.bfloat16), w1_ref[...],
                preferred_element_type=jnp.float32) + b1_ref[...]
    h = jnp.maximum(h, 0.0)

    # --- one Wang hash per element -> both dropout masks (16 bits each) ---
    row = lax.broadcasted_iota(jnp.int32, (tb, N_HIDDEN), 0)
    col = lax.broadcasted_iota(jnp.int32, (tb, N_HIDDEN), 1)
    base = (tile * tb + row) * N_HIDDEN + col
    hsh = _wang_hash(base + seed * jnp.int32(_SEED_MIX))
    keep1 = (hsh & jnp.int32(0xFFFF)) >= jnp.int32(KEEP_THRESH16)
    keep2 = _srl(hsh, 16) >= jnp.int32(KEEP_THRESH16)

    # --- dropout #1 (1/(1-p) scale folded into W2 at init) ---
    h = jnp.where(keep1, h, 0.0)

    # --- fc2 + relu (bf16 MXU operands, f32 accumulate & elementwise) ---
    h = jnp.dot(h.astype(jnp.bfloat16), w2_ref[...],
                preferred_element_type=jnp.float32) + b2_ref[...]
    h = jnp.maximum(h, 0.0)

    # --- dropout #2 (1/(1-p) scale folded into W3 at init) ---
    h = jnp.where(keep2, h, 0.0)

    # --- fc3: wide MXU matmul, narrow (TB, 2) store (64x less HBM writeback) ---
    res = jnp.dot(h.astype(jnp.bfloat16), w3_ref[...],
                  preferred_element_type=jnp.float32) + b3_ref[...]
    o_ref[...] = res[:, :N_OUT].astype(o_ref.dtype)


def _choose_tiling(B):
    """Pick (tile rows, num tiles): big tiles, multiple of 8, >=2 grid steps."""
    half = max(8, ((((B + 1) // 2) + 7) // 8) * 8)
    tb = min(TB_MAX, half)
    num_tiles = max(2, -(-B // tb))        # ceil-div, at least 2 (v7x megacore)
    return tb, num_tiles


def _qnet_forward_impl(x, params, seed):
    """x: (B, 4) f32; params: dict from init_params; seed: (1,) int32."""
    B = x.shape[0]
    tb, num_tiles = _choose_tiling(B)
    b_pad = tb * num_tiles
    # pad batch up to the grid extent and features 4 -> 8 for the MXU fc1
    x = jnp.pad(x, ((0, b_pad - B), (0, N_IN_PAD - N_IN)))

    grid_spec = pltpu.PrefetchScalarGridSpec(
        num_scalar_prefetch=1,
        grid=(num_tiles,),
        in_specs=[
            pl.BlockSpec((tb, N_IN_PAD), lambda i, s: (i, 0)),          # x (pipelined)
            pl.BlockSpec((N_IN_PAD, N_HIDDEN), lambda i, s: (0, 0)),    # w1 (resident, bf16)
            pl.BlockSpec((1, N_HIDDEN), lambda i, s: (0, 0)),           # b1
            pl.BlockSpec((N_HIDDEN, N_HIDDEN), lambda i, s: (0, 0)),    # w2 (bf16)
            pl.BlockSpec((1, N_HIDDEN), lambda i, s: (0, 0)),           # b2
            pl.BlockSpec((N_HIDDEN, N_HIDDEN), lambda i, s: (0, 0)),    # w3 (bf16, 0-padded cols)
            pl.BlockSpec((1, N_HIDDEN), lambda i, s: (0, 0)),           # b3 (0-padded cols)
        ],
        out_specs=pl.BlockSpec((tb, N_OUT), lambda i, s: (i, 0)),       # narrow store
    )

    out = pl.pallas_call(
        qnet_kernel,
        out_shape=jax.ShapeDtypeStruct((b_pad, N_OUT), jnp.float32),
        grid_spec=grid_spec,
        compiler_params=pltpu.CompilerParams(
            dimension_semantics=("parallel",)),   # batch tiles shard across TCs (v7x)
    )(seed, x,
      params["w1"], params["b1"],
      params["w2"], params["b2"],
      params["w3"], params["b3"])

    return out[:B]


qnet_forward = jax.jit(_qnet_forward_impl)


def init_params(key):
    """nn.Linear-style init; weights stored transposed (in, out).

    W1 is zero-padded to 8 input rows (MXU fc1). W2/W3 are pre-scaled by
    1/(1-p) (inverted-dropout scale folded into the following layer). All
    weights are stored bfloat16 (MXU operands); biases stay f32. W3/b3 are
    zero-padded to 128 output columns so the weight tile is lane-dense; the
    kernel slices the first 2 columns for the narrow output store.
    """
    k1, k2, k3, k4, k5, k6 = jax.random.split(key, 6)

    def uniform(k, shape, fan_in):
        bound = 1.0 / float(fan_in) ** 0.5
        return jax.random.uniform(k, shape, jnp.float32, -bound, bound)

    inv_keep = 1.0 / (1.0 - DROP_P)

    w1 = uniform(k1, (N_IN, N_HIDDEN), N_IN)
    w1 = jnp.pad(w1, ((0, N_IN_PAD - N_IN), (0, 0))).astype(jnp.bfloat16)
    b1 = uniform(k2, (1, N_HIDDEN), N_IN)

    w2 = (uniform(k3, (N_HIDDEN, N_HIDDEN), N_HIDDEN) * inv_keep).astype(jnp.bfloat16)
    b2 = uniform(k4, (1, N_HIDDEN), N_HIDDEN)

    w3 = uniform(k5, (N_HIDDEN, N_OUT), N_HIDDEN) * inv_keep
    b3 = uniform(k6, (1, N_OUT), N_HIDDEN)
    w3 = jnp.pad(w3, ((0, 0), (0, N_HIDDEN - N_OUT))).astype(jnp.bfloat16)
    b3 = jnp.pad(b3, ((0, 0), (0, N_HIDDEN - N_OUT)))

    return {"w1": w1, "b1": b1, "w2": w2, "b2": b2, "w3": w3, "b3": b3}


if __name__ == "__main__":
    key = jax.random.PRNGKey(0)
    pkey, xkey = jax.random.split(key)

    params = init_params(pkey)

    # Small deterministic example batch of CartPole states (B, 4).
    B = 32
    x = jax.random.normal(xkey, (B, N_IN), dtype=jnp.float32)
    # NOTE: vary the seed per training step on the host side, otherwise every
    # forward pass reuses identical dropout masks (biases training).
    seed = jnp.array([7], dtype=jnp.int32)

    out = qnet_forward(x, params, seed)
    out = jax.block_until_ready(out)

    assert out.shape == (B, N_OUT), out.shape
    assert out.dtype == jnp.float32, out.dtype
    assert bool(jnp.all(jnp.isfinite(out)))

    print("KERNEL_OK")
</pallas_src>

<mosaic_0001>
module attributes {stable_mosaic.version = 11 : i64} {
  func.func @qnet_kernel(%arg0: i32, %arg1: memref<1xi32, #tpu.memory_space<smem>>, %arg2: memref<16x8xf32, #tpu.memory_space<vmem>>, %arg3: memref<8x128xbf16, #tpu.memory_space<vmem>>, %arg4: memref<1x128xf32, #tpu.memory_space<vmem>>, %arg5: memref<128x128xbf16, #tpu.memory_space<vmem>>, %arg6: memref<1x128xf32, #tpu.memory_space<vmem>>, %arg7: memref<128x128xbf16, #tpu.memory_space<vmem>>, %arg8: memref<1x128xf32, #tpu.memory_space<vmem>>, %arg9: memref<16x2xf32, #tpu.memory_space<vmem>>) attributes {dimension_semantics = [#tpu.dimension_semantics<parallel>], iteration_bounds = array<i64: 2>, scalar_prefetch = 1 : i64, scratch_operands = 0 : i64, tpu.core_type = #tpu.core_type<tc>, window_params = [{transform_indices = @transform_0, window_bounds = array<i64: 16, 8>}, {pipeline_mode = #tpu.pipeline_mode<synchronous>, transform_indices = @transform_1, window_bounds = array<i64: 8, 128>}, {pipeline_mode = #tpu.pipeline_mode<synchronous>, transform_indices = @transform_2, window_bounds = array<i64: 1, 128>}, {pipeline_mode = #tpu.pipeline_mode<synchronous>, transform_indices = @transform_3, window_bounds = array<i64: 128, 128>}, {pipeline_mode = #tpu.pipeline_mode<synchronous>, transform_indices = @transform_4, window_bounds = array<i64: 1, 128>}, {pipeline_mode = #tpu.pipeline_mode<synchronous>, transform_indices = @transform_5, window_bounds = array<i64: 128, 128>}, {pipeline_mode = #tpu.pipeline_mode<synchronous>, transform_indices = @transform_6, window_bounds = array<i64: 1, 128>}, {transform_indices = @transform_7, window_bounds = array<i64: 16, 2>}]} {
    %c0 = arith.constant 0 : index
    %0 = memref.load %arg1[%c0] : memref<1xi32, #tpu.memory_space<smem>>
    %c0_0 = arith.constant 0 : index
    %c0_1 = arith.constant 0 : index
    %1 = vector.load %arg2[%c0_0, %c0_1] : memref<16x8xf32, #tpu.memory_space<vmem>>, vector<16x8xf32>
    %2 = arith.truncf %1 : vector<16x8xf32> to vector<16x8xbf16>
    %c0_2 = arith.constant 0 : index
    %c0_3 = arith.constant 0 : index
    %3 = vector.load %arg3[%c0_2, %c0_3] : memref<8x128xbf16, #tpu.memory_space<vmem>>, vector<8x128xbf16>
    %cst = arith.constant dense<0.000000e+00> : vector<16x128xf32>
    %4 = tpu.matmul %2, %3, %cst {dimension_numbers = #tpu.dot_dimension_numbers<[1], [0], [0], [1], [0, 0, 1, 1], [], []>} : vector<16x8xbf16>, vector<8x128xbf16>, vector<16x128xf32> -> vector<16x128xf32>
    %c0_4 = arith.constant 0 : index
    %c0_5 = arith.constant 0 : index
    %5 = vector.load %arg4[%c0_4, %c0_5] : memref<1x128xf32, #tpu.memory_space<vmem>>, vector<1x128xf32>
    %6 = vector.broadcast %5 : vector<1x128xf32> to vector<16x128xf32>
    %7 = arith.addf %4, %6 : vector<16x128xf32>
    %cst_6 = arith.constant 0.000000e+00 : f32
    %8 = vector.broadcast %cst_6 : f32 to vector<16x128xf32>
    %9 = arith.maximumf %7, %8 : vector<16x128xf32>
    %10 = tpu.iota {dimensions = array<i32: 0>} : vector<16x128xi32>
    %11 = tpu.iota {dimensions = array<i32: 1>} : vector<16x128xi32>
    %c16_i32 = arith.constant 16 : i32
    %12 = arith.muli %arg0, %c16_i32 : i32
    %13 = vector.broadcast %12 : i32 to vector<16x128xi32>
    %14 = arith.addi %13, %10 : vector<16x128xi32>
    %c128_i32 = arith.constant 128 : i32
    %15 = vector.broadcast %c128_i32 : i32 to vector<16x128xi32>
    %16 = arith.muli %14, %15 : vector<16x128xi32>
    %17 = arith.addi %16, %11 : vector<16x128xi32>
    %c1640531527_i32 = arith.constant 1640531527 : i32
    %18 = arith.muli %0, %c1640531527_i32 : i32
    %19 = vector.broadcast %18 : i32 to vector<16x128xi32>
    %20 = arith.addi %17, %19 : vector<16x128xi32>
    %c61_i32 = arith.constant 61 : i32
    %21 = vector.broadcast %c61_i32 : i32 to vector<16x128xi32>
    %22 = arith.xori %20, %21 : vector<16x128xi32>
    %c16_i32_7 = arith.constant 16 : i32
    %23 = vector.broadcast %c16_i32_7 : i32 to vector<16x128xi32>
    %24 = arith.shrui %20, %23 : vector<16x128xi32>
    %25 = arith.xori %22, %24 : vector<16x128xi32>
    %c9_i32 = arith.constant 9 : i32
    %26 = vector.broadcast %c9_i32 : i32 to vector<16x128xi32>
    %27 = arith.muli %25, %26 : vector<16x128xi32>
    %c4_i32 = arith.constant 4 : i32
    %28 = vector.broadcast %c4_i32 : i32 to vector<16x128xi32>
    %29 = arith.shrui %27, %28 : vector<16x128xi32>
    %30 = arith.xori %27, %29 : vector<16x128xi32>
    %c668265261_i32 = arith.constant 668265261 : i32
    %31 = vector.broadcast %c668265261_i32 : i32 to vector<16x128xi32>
    %32 = arith.muli %30, %31 : vector<16x128xi32>
    %c15_i32 = arith.constant 15 : i32
    %33 = vector.broadcast %c15_i32 : i32 to vector<16x128xi32>
    %34 = arith.shrui %32, %33 : vector<16x128xi32>
    %35 = arith.xori %32, %34 : vector<16x128xi32>
    %c65535_i32 = arith.constant 65535 : i32
    %36 = vector.broadcast %c65535_i32 : i32 to vector<16x128xi32>
    %37 = arith.andi %35, %36 : vector<16x128xi32>
    %c19660_i32 = arith.constant 19660 : i32
    %38 = vector.broadcast %c19660_i32 : i32 to vector<16x128xi32>
    %39 = arith.cmpi sge, %37, %38 : vector<16x128xi32>
    %c16_i32_8 = arith.constant 16 : i32
    %40 = vector.broadcast %c16_i32_8 : i32 to vector<16x128xi32>
    %41 = arith.shrui %35, %40 : vector<16x128xi32>
    %c19660_i32_9 = arith.constant 19660 : i32
    %42 = vector.broadcast %c19660_i32_9 : i32 to vector<16x128xi32>
    %43 = arith.cmpi sge, %41, %42 : vector<16x128xi32>
    %cst_10 = arith.constant 0.000000e+00 : f32
    %44 = vector.broadcast %cst_10 : f32 to vector<16x128xf32>
    %45 = arith.select %39, %9, %44 : vector<16x128xi1>, vector<16x128xf32>
    %46 = arith.truncf %45 : vector<16x128xf32> to vector<16x128xbf16>
    %c0_11 = arith.constant 0 : index
    %c0_12 = arith.constant 0 : index
    %47 = vector.load %arg5[%c0_11, %c0_12] : memref<128x128xbf16, #tpu.memory_space<vmem>>, vector<128x128xbf16>
    %cst_13 = arith.constant dense<0.000000e+00> : vector<16x128xf32>
    %48 = tpu.matmul %46, %47, %cst_13 {dimension_numbers = #tpu.dot_dimension_numbers<[1], [0], [0], [1], [0, 0, 1, 1], [], []>} : vector<16x128xbf16>, vector<128x128xbf16>, vector<16x128xf32> -> vector<16x128xf32>
    %c0_14 = arith.constant 0 : index
    %c0_15 = arith.constant 0 : index
    %49 = vector.load %arg6[%c0_14, %c0_15] : memref<1x128xf32, #tpu.memory_space<vmem>>, vector<1x128xf32>
    %50 = vector.broadcast %49 : vector<1x128xf32> to vector<16x128xf32>
    %51 = arith.addf %48, %50 : vector<16x128xf32>
    %cst_16 = arith.constant 0.000000e+00 : f32
    %52 = vector.broadcast %cst_16 : f32 to vector<16x128xf32>
    %53 = arith.maximumf %51, %52 : vector<16x128xf32>
    %cst_17 = arith.constant 0.000000e+00 : f32
    %54 = vector.broadcast %cst_17 : f32 to vector<16x128xf32>
    %55 = arith.select %43, %53, %54 : vector<16x128xi1>, vector<16x128xf32>
    %56 = arith.truncf %55 : vector<16x128xf32> to vector<16x128xbf16>
    %c0_18 = arith.constant 0 : index
    %c0_19 = arith.constant 0 : index
    %57 = vector.load %arg7[%c0_18, %c0_19] : memref<128x128xbf16, #tpu.memory_space<vmem>>, vector<128x128xbf16>
    %cst_20 = arith.constant dense<0.000000e+00> : vector<16x128xf32>
    %58 = tpu.matmul %56, %57, %cst_20 {dimension_numbers = #tpu.dot_dimension_numbers<[1], [0], [0], [1], [0, 0, 1, 1], [], []>} : vector<16x128xbf16>, vector<128x128xbf16>, vector<16x128xf32> -> vector<16x128xf32>
    %c0_21 = arith.constant 0 : index
    %c0_22 = arith.constant 0 : index
    %59 = vector.load %arg8[%c0_21, %c0_22] : memref<1x128xf32, #tpu.memory_space<vmem>>, vector<1x128xf32>
    %60 = vector.broadcast %59 : vector<1x128xf32> to vector<16x128xf32>
    %61 = arith.addf %58, %60 : vector<16x128xf32>
    %62 = vector.extract_strided_slice %61 {offsets = [0, 0], sizes = [16, 2], strides = [1, 1]} : vector<16x128xf32> to vector<16x2xf32>
    %c0_23 = arith.constant 0 : index
    %c0_24 = arith.constant 0 : index
    %63 = vector.load %arg9[%c0_23, %c0_24] : memref<16x2xf32, #tpu.memory_space<vmem>>, vector<16x2xf32>
    tpu.vector_store %arg9[%c0_23, %c0_24], %62 {strides = array<i32>} : memref<16x2xf32, #tpu.memory_space<vmem>>, vector<16x2xf32>,
    return
  }
  func.func @transform_0(%arg0: i32, %arg1: memref<1xi32, #tpu.memory_space<smem>>) -> (i32, i32) {
    %c0_i32 = arith.constant 0 : i32
    %c0_i32_0 = arith.constant 0 : i32
    return %arg0, %c0_i32 : i32, i32
  }
  func.func @transform_1(%arg0: i32, %arg1: memref<1xi32, #tpu.memory_space<smem>>) -> (i32, i32) {
    %c0_i32 = arith.constant 0 : i32
    %c0_i32_0 = arith.constant 0 : i32
    %c0_i32_1 = arith.constant 0 : i32
    return %c0_i32, %c0_i32_0 : i32, i32
  }
  func.func @transform_2(%arg0: i32, %arg1: memref<1xi32, #tpu.memory_space<smem>>) -> (i32, i32) {
    %c0_i32 = arith.constant 0 : i32
    %c0_i32_0 = arith.constant 0 : i32
    %c0_i32_1 = arith.constant 0 : i32
    return %c0_i32, %c0_i32_0 : i32, i32
  }
  func.func @transform_3(%arg0: i32, %arg1: memref<1xi32, #tpu.memory_space<smem>>) -> (i32, i32) {
    %c0_i32 = arith.constant 0 : i32
    %c0_i32_0 = arith.constant 0 : i32
    %c0_i32_1 = arith.constant 0 : i32
    return %c0_i32, %c0_i32_0 : i32, i32
  }
  func.func @transform_4(%arg0: i32, %arg1: memref<1xi32, #tpu.memory_space<smem>>) -> (i32, i32) {
    %c0_i32 = arith.constant 0 : i32
    %c0_i32_0 = arith.constant 0 : i32
    %c0_i32_1 = arith.constant 0 : i32
    return %c0_i32, %c0_i32_0 : i32, i32
  }
  func.func @transform_5(%arg0: i32, %arg1: memref<1xi32, #tpu.memory_space<smem>>) -> (i32, i32) {
    %c0_i32 = arith.constant 0 : i32
    %c0_i32_0 = arith.constant 0 : i32
    %c0_i32_1 = arith.constant 0 : i32
    return %c0_i32, %c0_i32_0 : i32, i32
  }
  func.func @transform_6(%arg0: i32, %arg1: memref<1xi32, #tpu.memory_space<smem>>) -> (i32, i32) {
    %c0_i32 = arith.constant 0 : i32
    %c0_i32_0 = arith.constant 0 : i32
    %c0_i32_1 = arith.constant 0 : i32
    return %c0_i32, %c0_i32_0 : i32, i32
  }
  func.func @transform_7(%arg0: i32, %arg1: memref<1xi32, #tpu.memory_space<smem>>) -> (i32, i32) {
    %c0_i32 = arith.constant 0 : i32
    %c0_i32_0 = arith.constant 0 : i32
    return %arg0, %c0_i32 : i32, i32
  }
}

</mosaic_0001>

<bundles_post_ra>
// kernel: _qnet_forward_impl.1
= control target key start
LH: loop header
LB: loop body
LE: loop exit
PB: predicated region body
PF: predicated region fallthrough
CT: control target
= control target key end

     0   :  { %s1050_s0 = inlined_call_operand.<no memory space> [shape: s32[1], index: 0, kind: input, shape index: {}]   ;;  %s1051_s1 = inlined_call_operand.vmem [shape: f32[32,8], index: 1, kind: input, shape index: {}]   ;;  %s1052_s2 = inlined_call_operand.vmem [shape: bf16[8,128], index: 2, kind: input, shape index: {}]   ;;  %s1053_s3 = inlined_call_operand.vmem [shape: f32[1,128], index: 3, kind: input, shape index: {}]   ;;  %s1054_s4 = inlined_call_operand.vmem [shape: bf16[128,128], index: 4, kind: input, shape index: {}]   ;;  %s1055_s5 = inlined_call_operand.vmem [shape: f32[1,128], index: 5, kind: input, shape index: {}]   ;;  %s1056_s6 = inlined_call_operand.hbm [shape: bf16[128,128], index: 6, kind: input, shape index: {}]   ;;  %s1057_s7 = inlined_call_operand.vmem [shape: f32[1,128], index: 7, kind: input, shape index: {}]   ;;  %s1058_s8 = inlined_call_operand.vmem [shape: f32[32,2], index: 8, kind: output, shape index: {}]  }
   0x1   :  { %13 = sst [smem:[#allocation3]] %s1050_s0 }
   0x2   :  { %14 = vsyncpa [#allocation5], 0  ;;  %s945_s29 = smov 0  }
   0x3 LB: > { %s951_s30 = sadd.s32 4294967295, %s890_s29   ;;  %p711_p0 = scmp.ge.s32.totalorder %s890_s29, 1  ;;  %s890_s29 = sphi %s945_s29, %s20_s29  }
   0x4   : > { %p203_p1 = scmp.lt.s32.totalorder %s890_s29, 3  ;;  %s892_s9 = smov [#allocation4]  }
   0x5   : > { %s227_s10 = sshll.u32 %s892_s9, 4  ;;  %p823_p3 = scmp.eq.s32.totalorder %s951_s30, 0  ;;  %s228_s10 = int_to_ptr.vmem [resolvable:$true] %s227_s10 }
   0x6   : > { %p955_p2 = pnand %p711_p0, %p203_p1  ;;  %s865_s11 = scalar_lea.vmem %s228_s10, 1024 }
   0x7   : > { %p866_p7 = scmp.ne.s32.totalorder %s228_s10, %s865_s11  ;;  %p873_p10 = scmp.lt.s32.totalorder %s228_s10, %s228_s10 }
   0x8   : > { %p819_p4 = pneg %p955_p2  ;;  %p874_p11 = scmp.lt.s32.totalorder %s865_s11, %s865_s11 }
   0xa   : > { %p820_p5 = pnand %p823_p3, %p819_p4  ;;  %p875_p12 = por %p874_p11, %p873_p10 }
   0xc   : > { %p856_p6 = pneg %p820_p5 }
   0xe   : > { %p868_p8 = pnand %p866_p7, %p856_p6 }
  0x10   : > { %p869_p9 = pneg %p868_p8 }
  0x12   : > { %p876_p13 = pnand %p875_p12, %p869_p9 }
  0x14   : > { %879 = shalt.err (!%p876_p13)
}
  0x15   : > { %s893_s12 = smov 64   ;;  %s894_s13 = smov 4  }
  0x16   : > { %822 = dma.hbm_to_vmem [thread:$0]  (!%p820_p5), %s1056_s6, 1024, %s228_s10, [#allocation5], %s893_s12, %s893_s12, %s894_s13  }
  0x17   : > { %255 = sbr.rel (%p955_p2) target bundleno = 644 (0x284), region = 48 }
  0x1c   : > { %885 = dma.done.wait (%p823_p3), [#allocation5], 1024  }
  0x1d   : > { %887 = vsyncadd (%p823_p3), [#allocation5], 4294966272  ;;  %s716_s16 = sshll.u32 %s951_s30, 1  ;;  %v895_v0 = vmov 0.0   ;;  %vm896_vm0 = vmmov 0   ;;  %vm316_vm1 = vcmask 1043456   ;;  %v363_v19 = vlaneseq }
  0x1e   : > { %769 = vmatprep.subr.bf16.mxu0 %v895_v0  ;;  %771 = vmatprep.mubr.msk.bf16.mxu0 %vm896_vm0, %v895_v0  ;;  %p288_p0 = scmp.lt.s32.totalorder %s716_s16, 3  ;;  %v304_v1 = vld [vmem:[%s1052_s2] sm:$0xf]  ;;  %v838_v6 = vld [vmem:[%s1054_s4 + $0x38] sm:$0xff]   ;;  %vm312_vm2 = vcmask 64512   ;;  %v839_v7 = vld [vmem:[%s1054_s4 + $0x30] sm:$0xff]  }
  0x1f   : > { %775 = vmatprep.subr.bf16.mxu1 %v895_v0  ;;  %791 = vmatprep.mubr.msk.bf16.mxu1 %vm896_vm0, %v895_v0  ;;  %v318_v4 = vsel %vm316_vm1, %v304_v1, 0  ;;  %v840_v8 = vld [vmem:[%s1054_s4 + $0x28] sm:$0xff]   ;;  %v841_v9 = vld [vmem:[%s1054_s4 + $0x20] sm:$0xff]   ;;  %v842_v10 = vld [vmem:[%s1054_s4 + $0x18] sm:$0xff]   ;;  %v364_v20 = vshrl.u32 %v363_v19, 7  ;;  %s300_s21 = sld [smem:[#allocation3]] }
  0x20   : > { %s1061_s16 = smov (!%p288_p0, %s716_s16), 3  ;;  %770 = vmatpush3.bf16.msra.mxu0 %v318_v4  ;;  %776 = vmatpush3.bf16.msra.mxu1 %v838_v6  ;;  %v843_v11 = vld [vmem:[%s1054_s4 + $0x10] sm:$0xff]   ;;  %v844_v12 = vld [vmem:[%s1054_s4 + $0x8] sm:$0xff]   ;;  %v845_v13 = vld [vmem:[%s1054_s4] sm:$0xff]   ;;  %v367_v25 = vand.u32 127, %v363_v19  ;;  %vm638_vm9 = vcmask 15360  }
  0x21   : > { %s717_s17 = sshll.u32 %s1061_s16, 3  ;;  %795 = vmatprep.subr.bf16.mxu0 %v895_v0  ;;  %777 = vmatprep.subr.bf16.mxu1 %v895_v0  ;;  %v846_v14 = vld [vmem:[#allocation4 + $0x38] sm:$0xff]   ;;  %v847_v15 = vld [vmem:[#allocation4 + $0x30] sm:$0xff]   ;;  %v848_v16 = vld [vmem:[#allocation4 + $0x28] sm:$0xff]   ;;  %v365_v21 = vadd.s32 8, %v364_v20 }
  0x22   : > { %s291_s20 = scalar_lea.vmem %s1051_s1, %s717_s17  ;;  %v849_v17 = vld [vmem:[#allocation4 + $0x20] sm:$0xff]   ;;  %v850_v18 = vld [vmem:[#allocation4 + $0x18] sm:$0xff]   ;;  %v851_v63 = vld [vmem:[#allocation4 + $0x10] sm:$0xff]   ;;  %s297_s10 = scalar_lea.vmem %s1058_s8, %s717_s17 }
  0x23   : > { %v301_v2 = vld [vmem:[%s291_s20] sm:$0xff]  ;;  %v302_v3 = vld [vmem:[%s291_s20 + $0x8] sm:$0xff]  ;;  %s722_s20 = sshll.u32 %s951_s30, 4 }
  0x24   : > { %v303_v5 = vpack.c.bf16 %v302_v3, %v301_v2  ;;  %778 = vmatpush3.bf16.msra.mxu1 %v839_v7  ;;  %v369_v22 = vstv %s722_s20  ;;  %v720_v51 = vld [vmem:[%s1053_s3] ss:$0 sm:$0xff]  ;;  %v852_v1 = vld [vmem:[#allocation4 + $0x8] sm:$0xff]  }
  0x25   : > { %779 = vmatprep.subr.bf16.mxu1 %v895_v0  ;;  %v370_v23 = vadd.s32 %v369_v22, %v364_v20  ;;  %v371_v24 = vadd.s32 %v369_v22, %v365_v21  ;;  %s376_s22 = smul.u32 1640531527, %s300_s21  ;;  %v853_v2 = vld [vmem:[#allocation4] sm:$0xff]  }
  0x26   : > { %772 = vmatmul.mubr.msk.bf16.vlgmr.msra.gmra.mxu0 %vm312_vm2, %v303_v5  ;;  %v723_v3 = vld [vmem:[%s1055_s5] ss:$0 sm:$0xff] }
  0x27   : > { %811 = vmatprep.mubr.msk.bf16.mxu0 %vm896_vm0, %v895_v0  ;;  %796 = vmatpush3.bf16.msra.mxu0 %v846_v14  ;;  %v372_v26 = vmul.u32 128, %v370_v23  ;;  %v373_v27 = vmul.u32 128, %v371_v24  ;;  %v377_v30 = vstv %s376_s22  ;;  %v735_v14 = vld [vmem:[%s1057_s7] ss:$0 sm:$0xff] }
  0x28   : > { %780 = vmatpush3.bf16.msra.mxu1 %v840_v8  ;;  %797 = vmatprep.subr.bf16.mxu0 %v895_v0 }
  0x29   : > { %781 = vmatprep.subr.bf16.mxu1 %v895_v0  ;;  %v374_v28 = vadd.s32 %v372_v26, %v367_v25  ;;  %v375_v29 = vadd.s32 %v373_v27, %v367_v25 }
  0x2b   : > { %798 = vmatpush3.bf16.msra.mxu0 %v847_v15  ;;  %v378_v31 = vadd.s32 %v377_v30, %v374_v28  ;;  %v379_v32 = vadd.s32 %v377_v30, %v375_v29 }
  0x2c   : > { %782 = vmatpush3.bf16.msra.mxu1 %v841_v9  ;;  %799 = vmatprep.subr.bf16.mxu0 %v895_v0 }
  0x2d   : > { %783 = vmatprep.subr.bf16.mxu1 %v895_v0  ;;  %v380_v33 = vxor.u32 61, %v378_v31  ;;  %v381_v34 = vxor.u32 61, %v379_v32  ;;  %v382_v35 = vshrl.u32 %v378_v31, 16  ;;  %v383_v36 = vshrl.u32 %v379_v32, 16 }
  0x2f   : > { %800 = vmatpush3.bf16.msra.mxu0 %v848_v16  ;;  %v384_v37 = vxor.u32 %v382_v35, %v380_v33  ;;  %v385_v38 = vxor.u32 %v383_v36, %v381_v34 }
  0x30   : > { %784 = vmatpush3.bf16.msra.mxu1 %v842_v10  ;;  %801 = vmatprep.subr.bf16.mxu0 %v895_v0 }
  0x31   : > { %785 = vmatprep.subr.bf16.mxu1 %v895_v0  ;;  %v386_v39 = vmul.u32 9, %v384_v37  ;;  %v387_v40 = vmul.u32 9, %v385_v38 }
  0x33   : > { %802 = vmatpush3.bf16.msra.mxu0 %v849_v17  ;;  %v388_v41 = vshrl.u32 %v386_v39, 4  ;;  %v389_v42 = vshrl.u32 %v387_v40, 4 }
  0x34   : > { %786 = vmatpush3.bf16.msra.mxu1 %v843_v11  ;;  %803 = vmatprep.subr.bf16.mxu0 %v895_v0 }
  0x35   : > { %787 = vmatprep.subr.bf16.mxu1 %v895_v0  ;;  %v390_v43 = vxor.u32 %v388_v41, %v386_v39  ;;  %v391_v44 = vxor.u32 %v389_v42, %v387_v40 }
  0x37   : > { %804 = vmatpush3.bf16.msra.mxu0 %v850_v18  ;;  %v392_v45 = vmul.u32 668265261, %v390_v43  ;;  %v393_v46 = vmul.u32 668265261, %v391_v44 }
  0x38   : > { %788 = vmatpush3.bf16.msra.mxu1 %v844_v12  ;;  %805 = vmatprep.subr.bf16.mxu0 %v895_v0 }
  0x39   : > { %789 = vmatprep.subr.bf16.mxu1 %v895_v0  ;;  %v394_v47 = vshrl.u32 %v392_v45, 15  ;;  %v395_v48 = vshrl.u32 %v393_v46, 15 }
  0x3b   : > { %v396_v49 = vxor.u32 %v394_v47, %v392_v45  ;;  %v397_v50 = vxor.u32 %v395_v48, %v393_v46  ;;  %806 = vmatpush3.bf16.msra.mxu0 %v851_v63 }
  0x3c   : > { %790 = vmatpush3.bf16.msra.mxu1 %v845_v13  ;;  %807 = vmatprep.subr.bf16.mxu0 %v895_v0 }
  0x3d   : > { %v398_v53 = vand.u32 65535, %v396_v49  ;;  %v399_v54 = vand.u32 65535, %v397_v50  ;;  %v402_v5 = vshrl.u32 %v396_v49, 16  ;;  %v403_v6 = vshrl.u32 %v397_v50, 16 }
  0x3f   : > { %vm400_vm3 = vcmp.ge.s32.totalorder %v398_v53, 19660  ;;  %vm401_vm4 = vcmp.ge.s32.totalorder %v399_v54, 19660  ;;  %808 = vmatpush3.bf16.msra.mxu0 %v852_v1  ;;  %vm404_vm6 = vcmp.ge.s32.totalorder %v402_v5, 19660  ;;  %vm405_vm7 = vcmp.ge.s32.totalorder %v403_v6, 19660 }
  0x40   : > { %vm732_vm5 = vmpackc.low %vm401_vm4, %vm400_vm3  ;;  %809 = vmatprep.subr.bf16.mxu0 %v895_v0 }
  0x41   : > { %vm744_vm8 = vmpackc.low %vm405_vm7, %vm404_vm6 }
  0x43   : > { %810 = vmatpush3.bf16.msra.mxu0 %v853_v2 }
  0xe6   : > { %v354_v52 = vpop.f32.mrf.mxu0 }
  0xe7   : > { %v355_v56 = vadd.f32 %v720_v51, %v354_v52 }
  0xe8   : > { %v773_v55 = vpop.f32.mrf.mxu0 }
  0xe9   : > { %v361_v60 = vmax.f32 %v355_v56, 0.0 }
  0xea   : > { %v357_v57 = vpop.f32.mrf.mxu0 }
  0xeb   : > { %v358_v58 = vadd.f32 %v720_v51, %v357_v57 }
  0xec   : > { %v774_v59 = vpop.f32.mrf.mxu0 }
  0xed   : > { %v362_v61 = vmax.f32 %v358_v58, 0.0 }
  0xef   : > { %v733_v62 = vpack.c.bf16 %v362_v61, %v361_v60 }
  0xf1   : > { %792 = vmatmul.mubr.msk.bf16.vlgmr.msra.gmra.mxu1 %vm732_vm5, %v733_v62 }
 0x1b1   : > { %v514_v4 = vpop.f32.mrf.mxu1 }
 0x1b2   : > { %v515_v8 = vadd.f32 %v723_v3, %v514_v4 }
 0x1b3   : > { %v793_v7 = vpop.f32.mrf.mxu1 }
 0x1b4   : > { %v521_v12 = vmax.f32 %v515_v8, 0.0 }
 0x1b5   : > { %v517_v9 = vpop.f32.mrf.mxu1 }
 0x1b6   : > { %v518_v10 = vadd.f32 %v723_v3, %v517_v9 }
 0x1b7   : > { %v794_v11 = vpop.f32.mrf.mxu1 }
 0x1b8   : > { %v522_v13 = vmax.f32 %v518_v10, 0.0 }
 0x1ba   : > { %v745_v0 = vpack.c.bf16 %v522_v13, %v521_v12 }
 0x1bc   : > { %812 = vmatmul.mubr.msk.bf16.vlgmr.msra.gmra.mxu0 %vm744_vm8, %v745_v0 }
 0x27c   : > { %v631_v15 = vpop.f32.mrf.mxu0 }
 0x27d   : > { %v632_v16 = vadd.f32 %v735_v14, %v631_v15 }
 0x27e   : > { %v813_v17 = vpop.f32.mrf.mxu0 }
 0x27f   : > { %639 = vst.msk [vmem:[%s297_s10] sm:$0xff] %vm638_vm9, %v632_v16 }
 0x280   : > { %v634_v18 = vpop.f32.mrf.mxu0 }
 0x281   : > { %v635_v19 = vadd.f32 %v735_v14, %v634_v18 }
 0x282   : > { %v814_v20 = vpop.f32.mrf.mxu0 }
 0x283   : > { %640 = vst.msk [vmem:[%s297_s10 + $0x8] sm:$0xff] %vm638_vm9, %v635_v19 }
 0x284 PF: > { %s20_s29 = sadd.s32 1, %s890_s29  }
 0x285   : > { %p17_p1 = scmp.ge.s32.totalorder %s20_s29, 4  }
 0x287   :  { %19 = sbr.rel (!%p17_p1) target bundleno = 3 (0x3), region = 83 }
 0x28c   :  { %663 = vsyncpa [#allocation5], 1 }
 0x28d   :  { %665 = vsyncpa [#allocation5 + $0x1], 1 }

</bundles_post_ra>
